<compile_context>
chip_gen: v6e
topology: v6e:2x2x1
jax: 0.10.0
libtpu: 0.0.40
codegen_flags: <defaults>
</compile_context>

<pallas_src>
import functools

import jax
import jax.numpy as jnp
from jax.experimental import pallas as pl
from jax.experimental.pallas import tpu as pltpu

_SUBLANES = 8
_LANES = 128
_F32_TEMPS = 6  # ~live f32 (tile_n, C) temporaries inside the kernel body


def _vfl_kernel(pred_ref, target_ref, part_ref, *, alpha, gamma, iou_weighted,
                n_rows, tile_n, needs_mask):
    """One row tile -> scalar partial loss, stored lane-dense in an (8,128) slab."""
    i = pl.program_id(0)

    pred_raw = pred_ref[...]                               # (tile_n, C), input dtype
    # Keep focal-weight arithmetic in bf16 when inputs are bf16 (native on v6e/v7x
    # VPU/EUP, halves vreg pressure of the big temporaries); otherwise f32.
    fw_dtype = jnp.bfloat16 if pred_raw.dtype == jnp.bfloat16 else jnp.float32
    pred_fw = pred_raw.astype(fw_dtype)
    target_fw = target_ref[...].astype(fw_dtype)

    # ---- focal weight -------------------------------------------------------
    # sigmoid(x) = 0.5*(1 + tanh(x/2)): one EUP op/element (vs exp + reciprocal).
    pred_new = 0.5 * (jnp.tanh(0.5 * pred_fw) + 1.0)
    diff = jnp.abs(pred_new - target_fw)
    if gamma == 1.0:                                       # trace-time fast paths:
        mod = diff
    elif gamma == 2.0:                                     # default
        mod = diff * diff
    elif float(gamma).is_integer() and 1.0 < gamma <= 8.0:
        mod = diff
        for _ in range(int(gamma) - 1):
            mod = mod * diff
    else:
        mod = jnp.power(diff, gamma)                       # exp(g*log|x|): 2 EUP ops
    pos_val = target_fw if iou_weighted else jnp.ones_like(mod)
    focal_weight = jnp.where(target_fw > 0.0, pos_val, alpha * mod)

    # ---- numerically stable log_softmax over classes (lane axis), in f32 ----
    pred = pred_raw.astype(jnp.float32)
    target = target_ref[...].astype(jnp.float32)           # == target.cast(pred.dtype)
    m = jnp.max(pred, axis=-1, keepdims=True)
    shifted = pred - m
    lse = jnp.log(jnp.sum(jnp.exp(shifted), axis=-1, keepdims=True))
    log_probs = shifted - lse

    contrib = focal_weight.astype(jnp.float32) * target * log_probs   # (tile_n, C)
    row_sums = jnp.sum(contrib, axis=-1, keepdims=True)               # (tile_n, 1)

    def _store(rs):
        tile_sum = -jnp.sum(rs)
        # Unmasked, (8,128)-aligned store of the partial (lane-dense output).
        part_ref[...] = jnp.broadcast_to(tile_sum, part_ref.shape).astype(jnp.float32)

    if needs_mask:
        last = pl.num_programs(0) - 1

        @pl.when(i == last)
        def _():
            # Mask only the padded rows of the final tile, on the cheap (tile_n, 1)
            # row sums; the select also discards any Inf/NaN produced from the
            # padded garbage rows.
            row_ids = i * tile_n + jax.lax.broadcasted_iota(jnp.int32, (tile_n, 1), 0)
            _store(jnp.where(row_ids < n_rows, row_sums, 0.0))

        @pl.when(i != last)
        def _():
            _store(row_sums)
    else:
        _store(row_sums)


def _vmem_capacity_bytes():
    try:
        cap = int(pltpu.get_tpu_info().vmem_capacity_bytes)
        if cap > 0:
            return cap
    except Exception:
        pass
    return 64 << 20  # conservative default (v7x per-TC VMEM)


def _choose_tile_n(n, c, in_bytes_per_elem, vmem_cap_bytes):
    """Biggest row tile such that streams + in-kernel f32 temps fit the VMEM budget."""
    if n <= _SUBLANES:
        return n
    # Budget: half the generation's VMEM, never more than 48 MiB.
    budget = min(vmem_cap_bytes // 2, 48 << 20)
    # Per row: 2 pipeline buffers x (pred + target) streams, plus ~6 live f32 temps.
    per_row = 2 * c * in_bytes_per_elem + _F32_TEMPS * c * 4
    tile = budget // max(per_row, 1)
    tile = max(_SUBLANES, min(int(tile), 1024))   # >=512 rows ~ roofline; cap pressure
    tile = (tile // _SUBLANES) * _SUBLANES
    tile = min(tile, (n // _SUBLANES) * _SUBLANES)
    # Guarantee >= 2 row tiles so the "parallel" grid axis can shard across v7x's
    # two TensorCores (no effect on single-TC v5e/v6e).
    tile = min(tile, max(_SUBLANES, ((n - 1) // _SUBLANES) * _SUBLANES))
    return tile


def varifocal_loss_pallas(pred, target, *, alpha=0.75, gamma=2.0,
                          iou_weighted=False, tile_n=None):
    """pred, target: (N, C). Returns scalar loss (float32), reduction='mean'."""
    N, C = pred.shape
    in_bytes = pred.dtype.itemsize + target.dtype.itemsize
    vmem_cap = _vmem_capacity_bytes()

    if tile_n is None:
        tile_n = _choose_tile_n(N, C, in_bytes, vmem_cap)
    else:
        tile_n = min(max(int(tile_n), 1), N)
        if tile_n < N:  # block sublane dim must be a multiple of 8 (or the full dim)
            tile_n = max(_SUBLANES, (tile_n // _SUBLANES) * _SUBLANES)

    num_tiles = pl.cdiv(N, tile_n)
    needs_mask = (N % tile_n) != 0

    kernel = functools.partial(
        _vfl_kernel, alpha=float(alpha), gamma=float(gamma),
        iou_weighted=bool(iou_weighted), n_rows=N, tile_n=tile_n,
        needs_mask=needs_mask)

    # Real footprint: double-buffered input streams + f32 temps + tiny output slab,
    # plus slack. Clamp to 5/8 of the generation's VMEM (40 MiB on v7x, 80 MiB on
    # v5e/v6e) and keep it above v5e's 16 MiB default scoped limit.
    footprint = (2 * tile_n * C * in_bytes + _F32_TEMPS * tile_n * C * 4
                 + 2 * _SUBLANES * _LANES * 4 + (2 << 20))
    vmem_limit = int(min(max(footprint, 32 << 20), (vmem_cap * 5) // 8))

    partials = pl.pallas_call(
        kernel,
        out_shape=jax.ShapeDtypeStruct((num_tiles, _SUBLANES, _LANES), jnp.float32),
        grid_spec=pltpu.PrefetchScalarGridSpec(
            num_scalar_prefetch=0,
            grid=(num_tiles,),
            in_specs=[
                pl.BlockSpec((tile_n, C), lambda i: (i, 0)),
                pl.BlockSpec((tile_n, C), lambda i: (i, 0)),
            ],
            out_specs=pl.BlockSpec((1, _SUBLANES, _LANES), lambda i: (i, 0, 0)),
        ),
        compiler_params=pltpu.CompilerParams(
            # No carried state: row tiles are independent -> megacore-shardable.
            dimension_semantics=("parallel",),
            vmem_limit_bytes=vmem_limit,
        ),
    )(pred, target)

    # Each tile broadcast its scalar partial across its (8,128) slab; read lane 0.
    return jnp.sum(partials[:, 0, 0]) / jnp.float32(N)


def varifocal_loss_ref(pred, target, alpha=0.75, gamma=2.0):
    pred_new = jax.nn.sigmoid(pred)
    pos = (target > 0.0).astype(jnp.float32)
    neg = (target <= 0.0).astype(jnp.float32)
    fw = pos + alpha * jnp.power(jnp.abs(pred_new - target), gamma) * neg
    logp = jax.nn.log_softmax(pred, axis=-1)
    per_sample = -jnp.sum(fw * target * logp, axis=-1)
    return jnp.mean(per_sample)


if __name__ == "__main__":
    key = jax.random.PRNGKey(0)
    k1, k2, k3 = jax.random.split(key, 3)

    N, C = 24, 32
    pred = jax.random.normal(k1, (N, C), dtype=jnp.float32)
    # iou-aware classification target: mostly zeros, some entries in (0, 1]
    scores = jax.random.uniform(k2, (N, C), dtype=jnp.float32)
    mask = (jax.random.uniform(k3, (N, C)) > 0.8).astype(jnp.float32)
    target = scores * mask

    ref = varifocal_loss_ref(pred, target)

    # Auto-sized tile: >=2 tiles (16 + masked partial tile of 8).
    loss_auto = jax.block_until_ready(varifocal_loss_pallas(pred, target))
    # Explicit even tiling (3 tiles of 8, no mask path).
    loss_even = jax.block_until_ready(varifocal_loss_pallas(pred, target, tile_n=8))

    assert jnp.allclose(loss_auto, ref, rtol=1e-5, atol=1e-5), (loss_auto, ref)
    assert jnp.allclose(loss_even, ref, rtol=1e-5, atol=1e-5), (loss_even, ref)

    print("KERNEL_OK")
</pallas_src>

<mosaic_0001>
module attributes {stable_mosaic.version = 11 : i64} {
  func.func @_vfl_kernel(%arg0: i32, %arg1: memref<16x32xf32, #tpu.memory_space<vmem>>, %arg2: memref<16x32xf32, #tpu.memory_space<vmem>>, %arg3: memref<1x8x128xf32, #tpu.memory_space<vmem>>) attributes {dimension_semantics = [#tpu.dimension_semantics<parallel>], iteration_bounds = array<i64: 2>, scalar_prefetch = 0 : i64, scratch_operands = 0 : i64, tpu.core_type = #tpu.core_type<tc>, window_params = [{transform_indices = @transform_0, window_bounds = array<i64: 16, 32>}, {transform_indices = @transform_1, window_bounds = array<i64: 16, 32>}, {transform_indices = @transform_2, window_bounds = array<i64: 1, 8, 128>}]} {
    %c0 = arith.constant 0 : index
    %c0_0 = arith.constant 0 : index
    %0 = vector.load %arg1[%c0, %c0_0] : memref<16x32xf32, #tpu.memory_space<vmem>>, vector<16x32xf32>
    %c0_1 = arith.constant 0 : index
    %c0_2 = arith.constant 0 : index
    %1 = vector.load %arg2[%c0_1, %c0_2] : memref<16x32xf32, #tpu.memory_space<vmem>>, vector<16x32xf32>
    %cst = arith.constant 5.000000e-01 : f32
    %2 = vector.broadcast %cst : f32 to vector<16x32xf32>
    %3 = arith.mulf %2, %0 : vector<16x32xf32>
    %4 = math.tanh %3 : vector<16x32xf32>
    %cst_3 = arith.constant 1.000000e+00 : f32
    %5 = vector.broadcast %cst_3 : f32 to vector<16x32xf32>
    %6 = arith.addf %4, %5 : vector<16x32xf32>
    %cst_4 = arith.constant 5.000000e-01 : f32
    %7 = vector.broadcast %cst_4 : f32 to vector<16x32xf32>
    %8 = arith.mulf %7, %6 : vector<16x32xf32>
    %9 = arith.subf %8, %1 : vector<16x32xf32>
    %10 = math.absf %9 : vector<16x32xf32>
    %11 = arith.mulf %10, %10 : vector<16x32xf32>
    %cst_5 = arith.constant 1.000000e+00 : f32
    %12 = vector.broadcast %cst_5 : f32 to vector<16x32xf32>
    %cst_6 = arith.constant 0.000000e+00 : f32
    %13 = vector.broadcast %cst_6 : f32 to vector<16x32xf32>
    %14 = arith.cmpf ogt, %1, %13 : vector<16x32xf32>
    %cst_7 = arith.constant 7.500000e-01 : f32
    %15 = vector.broadcast %cst_7 : f32 to vector<16x32xf32>
    %16 = arith.mulf %15, %11 : vector<16x32xf32>
    %17 = arith.select %14, %12, %16 : vector<16x32xi1>, vector<16x32xf32>
    %c0_8 = arith.constant 0 : index
    %c0_9 = arith.constant 0 : index
    %18 = vector.load %arg2[%c0_8, %c0_9] : memref<16x32xf32, #tpu.memory_space<vmem>>, vector<16x32xf32>
    %cst_10 = arith.constant dense<0xFF800000> : vector<16xf32>
    %19 = vector.multi_reduction <maximumf>, %0, %cst_10 [1] : vector<16x32xf32> to vector<16xf32>
    %20 = vector.shape_cast %19 : vector<16xf32> to vector<16x1xf32>
    %21 = vector.broadcast %20 : vector<16x1xf32> to vector<16x32xf32>
    %22 = arith.subf %0, %21 : vector<16x32xf32>
    %23 = math.exp %22 : vector<16x32xf32>
    %cst_11 = arith.constant dense<0.000000e+00> : vector<16xf32>
    %24 = vector.multi_reduction <add>, %23, %cst_11 [1] : vector<16x32xf32> to vector<16xf32>
    %25 = vector.shape_cast %24 : vector<16xf32> to vector<16x1xf32>
    %26 = math.log %25 : vector<16x1xf32>
    %27 = vector.broadcast %26 : vector<16x1xf32> to vector<16x32xf32>
    %28 = arith.subf %22, %27 : vector<16x32xf32>
    %29 = arith.mulf %17, %18 : vector<16x32xf32>
    %30 = arith.mulf %29, %28 : vector<16x32xf32>
    %cst_12 = arith.constant dense<0.000000e+00> : vector<16xf32>
    %31 = vector.multi_reduction <add>, %30, %cst_12 [1] : vector<16x32xf32> to vector<16xf32>
    %32 = vector.shape_cast %31 : vector<16xf32> to vector<16x1xf32>
    %c1_i32 = arith.constant 1 : i32
    %33 = arith.cmpi eq, %arg0, %c1_i32 : i32
    %34 = arith.extui %33 : i1 to i32
    %c0_i32 = arith.constant 0 : i32
    %35 = arith.cmpi ne, %34, %c0_i32 : i32
    scf.if %35 {
      %c16_i32 = arith.constant 16 : i32
      %39 = arith.muli %arg0, %c16_i32 : i32
      %40 = tpu.iota {dimensions = array<i32: 0>} : vector<16x1xi32>
      %41 = vector.broadcast %39 : i32 to vector<16x1xi32>
      %42 = arith.addi %41, %40 : vector<16x1xi32>
      %c24_i32 = arith.constant 24 : i32
      %43 = vector.broadcast %c24_i32 : i32 to vector<16x1xi32>
      %44 = arith.cmpi slt, %42, %43 : vector<16x1xi32>
      %cst_15 = arith.constant 0.000000e+00 : f32
      %45 = vector.broadcast %cst_15 : f32 to vector<16x1xf32>
      %46 = arith.select %44, %32, %45 : vector<16x1xi1>, vector<16x1xf32>
      %47 = vector.shape_cast %46 : vector<16x1xf32> to vector<1x16x1xf32>
      %cst_16 = arith.constant dense<0.000000e+00> : vector<1xf32>
      %48 = vector.multi_reduction <add>, %47, %cst_16 [1, 2] : vector<1x16x1xf32> to vector<1xf32>
      %49 = vector.shape_cast %48 : vector<1xf32> to vector<1x1x1xf32>
      %50 = vector.extract %49[0, 0, 0] : f32 from vector<1x1x1xf32>
      %cst_17 = arith.constant 0.000000e+00 : f32
      %51 = arith.subf %cst_17, %50 : f32
      %52 = vector.broadcast %51 : f32 to vector<1x8x128xf32>
      %c0_18 = arith.constant 0 : index
      %c0_19 = arith.constant 0 : index
      %c0_20 = arith.constant 0 : index
      %53 = vector.load %arg3[%c0_18, %c0_19, %c0_20] : memref<1x8x128xf32, #tpu.memory_space<vmem>>, vector<1x8x128xf32>
      tpu.vector_store %arg3[%c0_18, %c0_19, %c0_20], %52 {strides = array<i32>} : memref<1x8x128xf32, #tpu.memory_space<vmem>>, vector<1x8x128xf32>,
    } else {
    }
    %c1_i32_13 = arith.constant 1 : i32
    %36 = arith.cmpi ne, %arg0, %c1_i32_13 : i32
    %37 = arith.extui %36 : i1 to i32
    %c0_i32_14 = arith.constant 0 : i32
    %38 = arith.cmpi ne, %37, %c0_i32_14 : i32
    scf.if %38 {
      %39 = vector.shape_cast %32 : vector<16x1xf32> to vector<1x16x1xf32>
      %cst_15 = arith.constant dense<0.000000e+00> : vector<1xf32>
      %40 = vector.multi_reduction <add>, %39, %cst_15 [1, 2] : vector<1x16x1xf32> to vector<1xf32>
      %41 = vector.shape_cast %40 : vector<1xf32> to vector<1x1x1xf32>
      %42 = vector.extract %41[0, 0, 0] : f32 from vector<1x1x1xf32>
      %cst_16 = arith.constant 0.000000e+00 : f32
      %43 = arith.subf %cst_16, %42 : f32
      %44 = vector.broadcast %43 : f32 to vector<1x8x128xf32>
      %c0_17 = arith.constant 0 : index
      %c0_18 = arith.constant 0 : index
      %c0_19 = arith.constant 0 : index
      %45 = vector.load %arg3[%c0_17, %c0_18, %c0_19] : memref<1x8x128xf32, #tpu.memory_space<vmem>>, vector<1x8x128xf32>
      tpu.vector_store %arg3[%c0_17, %c0_18, %c0_19], %44 {strides = array<i32>} : memref<1x8x128xf32, #tpu.memory_space<vmem>>, vector<1x8x128xf32>,
    } else {
    }
    return
  }
  func.func @transform_0(%arg0: i32) -> (i32, i32) {
    %c0_i32 = arith.constant 0 : i32
    %c0_i32_0 = arith.constant 0 : i32
    return %arg0, %c0_i32 : i32, i32
  }
  func.func @transform_1(%arg0: i32) -> (i32, i32) {
    %c0_i32 = arith.constant 0 : i32
    %c0_i32_0 = arith.constant 0 : i32
    return %arg0, %c0_i32 : i32, i32
  }
  func.func @transform_2(%arg0: i32) -> (i32, i32, i32) {
    %c0_i32 = arith.constant 0 : i32
    %c0_i32_0 = arith.constant 0 : i32
    %c0_i32_1 = arith.constant 0 : i32
    return %arg0, %c0_i32, %c0_i32_0 : i32, i32, i32
  }
}

</mosaic_0001>

<bundles_post_ra>
// kernel: tpu_custom_call.1
= control target key start
LH: loop header
LB: loop body
LE: loop exit
PB: predicated region body
PF: predicated region fallthrough
CT: control target
= control target key end

     0   :  { %7 = vsyncpa [#allocation3], 0  ;;  %s894_s0 = inlined_call_operand.hbm [shape: f32[24,32], index: 0, kind: input, shape index: {}]   ;;  %s895_s1 = inlined_call_operand.hbm [shape: f32[24,32], index: 1, kind: input, shape index: {}]   ;;  %s896_s2 = inlined_call_operand.hbm [shape: f32[2,8,128], index: 2, kind: output, shape index: {}]  }
   0x1   :  { %9 = vsyncpa [#allocation3 + $0x1], 0 }
   0x2   :  { %10 = vsyncpa [#allocation6], 0 }
   0x3   :  { %12 = vsyncpa [#allocation6 + $0x1], 0 }
   0x4   :  { %13 = vsyncpa [#allocation4], 0 }
   0x5   :  { %15 = vsyncpa [#allocation4 + $0x1], 0  ;;  %s676_s9 = smov 0   ;;  %s678_s10 = smov 0  }
   0x6   :  { %s680_s11 = smov 0   ;;  %s682_s12 = smov 0  }
   0x7 LB: > { %s697_s13 = sadd.s32 4294967295, %s652_s12   ;;  %s441_s14 = sadd.s32 4294967294, %s652_s12   ;;  %s652_s12 = sphi %s682_s12, %s911_s12   ;;  %s648_s11 = sphi %s680_s11, %s910_s11   ;;  %s644_s10 = sphi %s678_s10, %s909_s10   ;;  %s640_s9 = sphi %s676_s9, %s908_s9  }
   0x8   : > { %s701_s15 = sadd.s32 1, %s652_s12   ;;  %s28_s16 = sadd.s32 1, %s648_s11 }
   0x9   : > { %s25_s17 = ssub.s32 %s652_s12, %s701_s15  ;;  %p35_p0 = scmp.ne.s32.totalorder %s648_s11, %s644_s10 }
   0xa   : > { %p26_p1 = scmp.eq.s32.totalorder %s25_s17, 0  ;;  %p36_p2 = scmp.eq.s32.totalorder %s652_s12, 0 }
   0xb   : > { %p41_p3 = scmp.ne.s32.totalorder %s644_s10, %s640_s9  ;;  %p42_p4 = scmp.eq.s32.totalorder %s697_s13, 0 }
   0xc   : > { %s713_s18 = scalar_select %p26_p1, %s648_s11, %s28_s16  }
   0xd   : > { %p715_p5 = por %p36_p2, %p35_p0  ;;  %p719_p6 = por %p42_p4, %p41_p3 }
   0xe   : > { %p898_p7 = scmp.eq.s32.totalorder %s697_s13, 1  ;;  %p97_p8 = scmp.eq.s32.totalorder %s441_s14, 1 }
   0xf   : > { %p897_p11 = scmp.ge.s32.totalorder %s652_s12, 2 }
  0x10   : > { %p726_p9 = por %p898_p7, %p35_p0  ;;  %p730_p10 = por %p97_p8, %p41_p3 }
  0x11   : > { %113 = sbr.rel (%p897_p11) target bundleno = 86 (0x56), region = 16 }
  0x12   : > { %s902_s21 = scalar_select %p726_p9, 1, 0 }
  0x13   : > { %s903_s22 = scalar_select %p730_p10, 1, 0 }
  0x16   : > { %116 = sbr.rel (!%p715_p5) target bundleno = 54 (0x36), region = 20  ;;  %s117_s23 = sand.u32 (%p715_p5), 1, %s648_s11  }
  0x17   : > { %s445_s24 = sshll.u32 (%p715_p5), %s652_s12, 1  ;;  %s444_s25 = sshll.u32 (%p715_p5), %s117_s23, 4 }
  0x18   : > { %s123_s26 = ssub.s32 (%p715_p5), 3, %s445_s24  ;;  %s744_s29 = scalar_lea.sflag (%p715_p5), [#allocation3], %s117_s23 }
  0x19   : > { %p124_p12 = scmp.lt.s32.totalorder (%p715_p5), %s123_s26, 2  ;;  %s121_s30 = scalar_lea.vmem (%p715_p5), [#allocation2], %s444_s25 }
  0x1b   : > { %s913_s26 = smov (!%p124_p12, %s123_s26), 2 }
  0x1c   : > { %s741_s27 = sshll.u32 %s913_s26, 7 }
  0x1d   : > { %s128_s28 = ssub.s32 256, %s741_s27 }
  0x1e   : > { %129 = vsyncadd %s744_s29, %s128_s28  ;;  %p447_p13 = scmp.ne.s32.totalorder %s741_s27, 0  ;;  %s469_s3 = sshll.u32 %s652_s12, 8 }
  0x1f   : > { %s752_s6 = scalar_lea.hbm %s894_s0, %s469_s3  ;;  %s134_s7 = sshll.u32 %s121_s30, 4  ;;  %s754_s7 = int_to_ptr.vmem [resolvable:$true] %s134_s7 }
  0x20   : > { %s532_s8 = scalar_lea.hbm %s752_s6, %s741_s27  ;;  %s536_s17 = scalar_lea.hbm %s894_s0, 384 }
  0x21   : > { %p533_p0 = scmp.ne.s32.totalorder %s752_s6, %s532_s8  ;;  %p537_p3 = scmp.lt.s32.totalorder %s752_s6, %s894_s0 }
  0x22   : > { %p538_p4 = scmp.lt.s32.totalorder %s536_s17, %s532_s8 }
  0x23   : > { %p534_p1 = pnand %p533_p0, %p447_p13 }
  0x24   : > { %p539_p8 = por %p538_p4, %p537_p3 }
  0x25   : > { %p535_p2 = pneg %p534_p1 }
  0x27   : > { %p540_p12 = pnand %p539_p8, %p535_p2 }
  0x29   : > { %543 = shalt.err (!%p540_p12)
}
  0x2a   : > { %s544_s25 = scalar_lea.vmem %s754_s7, %s741_s27  ;;  %s654_s26 = smov [#allocation2]  }
  0x2b   : > { %p545_p0 = scmp.ne.s32.totalorder %s754_s7, %s544_s25  ;;  %s548_s28 = sshll.u32 %s654_s26, 4  ;;  %s549_s28 = int_to_ptr.vmem [resolvable:$false] %s548_s28 }
  0x2c   : > { %s550_s30 = scalar_lea.vmem %s549_s28, 512  ;;  %p551_p7 = scmp.lt.s32.totalorder %s754_s7, %s549_s28 }
  0x2d   : > { %p546_p1 = pnand %p545_p0, %p447_p13  ;;  %p552_p10 = scmp.lt.s32.totalorder %s550_s30, %s544_s25 }
  0x2f   : > { %p547_p11 = pneg %p546_p1  ;;  %p553_p9 = por %p552_p10, %p551_p7 }
  0x31   : > { %p554_p3 = pnand %p553_p9, %p547_p11 }
  0x33   : > { %557 = shalt.err (!%p554_p3)
}
  0x34   : > { %s655_s3 = smov 128   ;;  %s656_s4 = smov 8  }
  0x35   : > { %140 = dma.hbm_to_vmem [thread:$0]  (%p447_p13), %s752_s6, %s741_s27, %s754_s7, %s744_s29, %s655_s3, %s655_s3, %s656_s4  }
  0x36 PF: > { %143 = sbr.rel (!%p715_p5) target bundleno = 86 (0x56), region = 24  ;;  %s144_s5 = sand.u32 (%p715_p5), 1, %s648_s11  }
  0x37   : > { %s452_s8 = sshll.u32 (%p715_p5), %s652_s12, 1  ;;  %s451_s14 = sshll.u32 (%p715_p5), %s144_s5, 4 }
  0x38   : > { %s150_s16 = ssub.s32 (%p715_p5), 3, %s452_s8  ;;  %s787_s24 = scalar_lea.sflag (%p715_p5), [#allocation6], %s144_s5 }
  0x39   : > { %p151_p7 = scmp.lt.s32.totalorder (%p715_p5), %s150_s16, 2  ;;  %s148_s27 = scalar_lea.vmem (%p715_p5), [#allocation5], %s451_s14 }
  0x3b   : > { %s915_s16 = smov (!%p151_p7, %s150_s16), 2 }
  0x3c   : > { %s784_s17 = sshll.u32 %s915_s16, 7 }
  0x3d   : > { %s155_s23 = ssub.s32 256, %s784_s17 }
  0x3e   : > { %156 = vsyncadd %s787_s24, %s155_s23  ;;  %p454_p5 = scmp.ne.s32.totalorder %s784_s17, 0  ;;  %s470_s19 = sshll.u32 %s652_s12, 8 }
  0x3f   : > { %s795_s7 = scalar_lea.hbm %s895_s1, %s470_s19  ;;  %s161_s25 = sshll.u32 %s148_s27, 4  ;;  %s797_s25 = int_to_ptr.vmem [resolvable:$true] %s161_s25 }
  0x40   : > { %s558_s26 = scalar_lea.hbm %s795_s7, %s784_s17  ;;  %s562_s3 = scalar_lea.hbm %s895_s1, 384 }
  0x41   : > { %p559_p9 = scmp.ne.s32.totalorder %s795_s7, %s558_s26  ;;  %p563_p13 = scmp.lt.s32.totalorder %s795_s7, %s895_s1 }
  0x42   : > { %p564_p2 = scmp.lt.s32.totalorder %s562_s3, %s558_s26 }
  0x43   : > { %p560_p10 = pnand %p559_p9, %p454_p5 }
  0x44   : > { %p565_p4 = por %p564_p2, %p563_p13 }
  0x45   : > { %p561_p11 = pneg %p560_p10 }
  0x47   : > { %p566_p8 = pnand %p565_p4, %p561_p11 }
  0x49   : > { %569 = shalt.err (!%p566_p8)
}
  0x4a   : > { %s570_s8 = scalar_lea.vmem %s797_s25, %s784_s17  ;;  %s657_s14 = smov [#allocation5]  }
  0x4b   : > { %p571_p12 = scmp.ne.s32.totalorder %s797_s25, %s570_s8  ;;  %s574_s16 = sshll.u32 %s657_s14, 4  ;;  %s575_s16 = int_to_ptr.vmem [resolvable:$false] %s574_s16 }
  0x4c   : > { %s576_s23 = scalar_lea.vmem %s575_s16, 512  ;;  %p577_p3 = scmp.lt.s32.totalorder %s797_s25, %s575_s16 }
  0x4d   : > { %p572_p0 = pnand %p571_p12, %p454_p5  ;;  %p578_p7 = scmp.lt.s32.totalorder %s576_s23, %s570_s8 }
  0x4f   : > { %p573_p1 = pneg %p572_p0  ;;  %p579_p9 = por %p578_p7, %p577_p3 }
  0x51   : > { %p580_p10 = pnand %p579_p9, %p573_p1 }
  0x53   : > { %583 = shalt.err (!%p580_p10)
}
  0x54   : > { %s658_s27 = smov 128   ;;  %s659_s19 = smov 8  }
  0x55   : > { %167 = dma.hbm_to_vmem [thread:$0]  (%p454_p5), %s795_s7, %s784_s17, %s797_s25, %s787_s24, %s658_s27, %s658_s27, %s659_s19  }
  0x56 PF: > { %p458_p11 = scmp.ge.s32.totalorder %s652_s12, 1  ;;  %p169_p13 = scmp.lt.s32.totalorder %s652_s12, 3 }
  0x58   : > { %p170_p2 = pnand %p458_p11, %p169_p13 }
  0x59   : > { %s826_s29 = sand.u32 (!%p170_p2), 1, %s644_s10  }
  0x5a   : > { %173 = sbr.rel (%p170_p2) target bundleno = 1014 (0x3f6), region = 28  ;;  %s459_s6 = sshll.u32 (!%p170_p2), %s826_s29, 4 }
  0x5b   : > { %s176_s26 = scalar_lea.sflag (!%p170_p2), [#allocation3], %s826_s29  ;;  %s179_s28 = scalar_lea.vmem (!%p170_p2), [#allocation2], %s459_s6 }
  0x5f   : > { %627 = dma.done.wait (%p719_p6), %s176_s26, 256  }
  0x60   : > { %629 = vsyncadd (%p719_p6), %s176_s26, 4294967040  ;;  %s185_s17 = scalar_lea.sflag [#allocation6], %s826_s29  ;;  %s835_s24 = scalar_lea.vmem [#allocation5], %s459_s6 }
  0x61   : > { %631 = dma.done.wait (%p719_p6), %s185_s17, 256  }
  0x62   : > { %633 = vsyncadd (%p719_p6), %s185_s17, 4294967040  ;;  %vm248_vm0 = vcmask 261120   ;;  %v224_v0 = vld [vmem:[%s179_s28] sm:$0xff]  ;;  %v225_v1 = vld [vmem:[%s179_s28 + $0x8] sm:$0xff]  ;;  %s461_s20 = sshll.u32 %s826_s29, 3  ;;  %p462_p6 = scmp.ne.s32.totalorder %s697_s13, 1 }
  0x63   : > { %v249_v2 = vsel %vm248_vm0, %v224_v0, -inf  ;;  %v252_v3 = vsel %vm248_vm0, %v225_v1, -inf  ;;  %v228_v14 = vmul.f32 0.5, %v224_v0  ;;  %v229_v15 = vmul.f32 0.5, %v225_v1  ;;  %v226_v21 = vld [vmem:[%s835_s24] sm:$0xff]  ;;  %v227_v24 = vld [vmem:[%s835_s24 + $0x8] sm:$0xff] }
  0x64   : > { %250 = vmax.xlane.f32.xlu0 %v249_v2  ;;  %vm242_vm1 = vcmp.gt.f32.partialorder %v226_v21, 0.0  ;;  %vm243_vm2 = vcmp.gt.f32.partialorder %v227_v24, 0.0  ;;  %s850_s7 = scalar_lea.vmem [#allocation7], %s461_s20  ;;  %s463_s25 = sshll.u32 (!%p462_p6), %s697_s13, 4 }
  0x68   : > { %253 = vmax.xlane.f32.xlu0 %v252_v3 }
  0xed   : > { %v251_v4 = vpop.xlane.xlu0 %250 }
  0xee   : > { %v255_v5 = vsub.f32 %v224_v0, %v251_v4 }
  0xf0   : > { %v257_v6 = vmul.f32 1.442695, %v255_v5 }
  0xf1   : > { %v254_v7 = vpop.xlane.xlu0 %253 }
  0xf2   : > { %520 = vpow2.f32 %v257_v6  ;;  %v256_v8 = vsub.f32 %v225_v1, %v254_v7 }
  0xf4   : > { %v259_v9 = vmul.f32 1.442695, %v256_v8 }
  0xf6   : > { %522 = vpow2.f32 %v259_v9 }
  0xf7   : > { %524 = vtanh.f32 %v228_v14 }
  0xf8   : > { %526 = vtanh.f32 %v229_v15 }
  0xff   : > { %v521_v10 = vpop.eup %520 }
 0x100   : > { %v261_v11 = vsel %vm248_vm0, %v521_v10, 0.0 }
 0x101   : > { %262 = vadd.xlane.f32.xlu1 %v261_v11 }
 0x103   : > { %v523_v12 = vpop.eup %522 }
 0x104   : > { %v264_v13 = vsel %vm248_vm0, %v523_v12, 0.0  ;;  %v525_v16 = vpop.eup %524 }
 0x105   : > { %265 = vadd.xlane.f32.xlu1 %v264_v13  ;;  %v232_v17 = vadd.f32 1.0, %v525_v16  ;;  %v527_v18 = vpop.eup %526 }
 0x106   : > { %v233_v20 = vadd.f32 1.0, %v527_v18 }
 0x107   : > { %v234_v19 = vmul.f32 0.5, %v232_v17 }
 0x108   : > { %v235_v22 = vmul.f32 0.5, %v233_v20 }
 0x109   : > { %v236_v23 = vsub.f32 %v234_v19, %v226_v21 }
 0x10a   : > { %v237_v27 = vsub.f32 %v235_v22, %v227_v24 }
 0x10b   : > { %v238_v26 = vand.u32 2147483647, %v236_v23 }
 0x10c   : > { %v239_v30 = vand.u32 2147483647, %v237_v27 }
 0x10d   : > { %v240_v29 = vmul.f32 %v238_v26, %v238_v26 }
 0x10e   : > { %v241_v32 = vmul.f32 %v239_v30, %v239_v30 }
 0x10f   : > { %v244_v31 = vmul.f32 0.75, %v240_v29 }
 0x110   : > { %v245_v34 = vmul.f32 0.75, %v241_v32 }
 0x111   : > { %v246_v33 = vsel %vm242_vm1, 1.0, %v244_v31 }
 0x112   : > { %v273_v37 = vmul.f32 %v246_v33, %v226_v21  ;;  %v247_v38 = vsel %vm243_vm2, 1.0, %v245_v34 }
 0x113   : > { %v274_v43 = vmul.f32 %v247_v38, %v227_v24 }
 0x18a   : > { %v263_v25 = vpop.xlane.xlu1 %262 }
 0x18b   : > { %528 = vlog2.f32 %v263_v25 }
 0x18e   : > { %v266_v28 = vpop.xlane.xlu1 %265 }
 0x18f   : > { %530 = vlog2.f32 %v266_v28 }
 0x198   : > { %v529_v35 = vpop.eup %528 }
 0x199   : > { %v268_v36 = vmul.f32 0.6931472, %v529_v35 }
 0x19b   : > { %v271_v39 = vsub.f32 %v255_v5, %v268_v36 }
 0x19c   : > { %v531_v40 = vpop.eup %530 }
 0x19d   : > { %v270_v41 = vmul.f32 0.6931472, %v531_v40  ;;  %v275_v42 = vmul.f32 %v273_v37, %v271_v39 }
 0x19f   : > { %v277_v44 = vsel %vm248_vm0, %v275_v42, 0.0  ;;  %v272_v45 = vsub.f32 %v256_v8, %v270_v41 }
 0x1a0   : > { %278 = vadd.xlane.f32.xlu0 %v277_v44 }
 0x1a1   : > { %v276_v46 = vmul.f32 %v274_v43, %v272_v45 }
 0x1a3   : > { %v280_v47 = vsel %vm248_vm0, %v276_v46, 0.0 }
 0x1a4   : > { %281 = vadd.xlane.f32.xlu1 %v280_v47 }
 0x229   : > { %v279_v48 = vpop.xlane.xlu0 %278  ;;  %286 = sbr.rel (%p462_p6) target bundleno = 775 (0x307), region = 40 }
 0x22d   : > { %v282_v49 = vpop.xlane.xlu1 %281 }
 0x22e   : > { %v288_v50 = vlaneseq  ;;  %v291_v51 = vstv %s463_s25  ;;  %vm298_vm3 = vcmask 7168  }
 0x230   : > { %v289_v52 = vshrl.u32 %v288_v50, 7 }
 0x232   : > { %v290_v53 = vadd.s32 8, %v289_v52  ;;  %v292_v54 = vadd.s32 %v291_v51, %v289_v52 }
 0x234   : > { %v293_v55 = vadd.s32 %v291_v51, %v290_v53  ;;  %vm294_vm4 = vcmp.lt.s32.totalorder %v292_v54, 24 }
 0x235   : > { %v296_v56 = vsel %vm294_vm4, %v279_v48, 0.0 }
 0x236   : > { %vm295_vm5 = vcmp.lt.s32.totalorder %v293_v55, 24  ;;  %v299_v57 = vsel %vm298_vm3, %v296_v56, 0.0 }
 0x237   : > { %v297_v58 = vsel %vm295_vm5, %v282_v49, 0.0 }
 0x238   : > { %v300_v59 = vsel %vm298_vm3, %v297_v58, 0.0 }
 0x239   : > { %v301_v60 = vadd.f32 %v300_v59, %v299_v57 }
 0x23b   : > { %302 = vadd.xlane.f32.xlu0 %v301_v60 }
 0x2c4   : > { %v303_v61 = vpop.xlane.xlu0 %302 }
 0x2c5   : > { %v304_v62 = vrot.slane %v303_v61, 4 }
 0x2c7   : > { %v305_v63 = vadd.f32 %v304_v62, %v303_v61 }
 0x2c9   : > { %v306_v0 = vrot.slane %v305_v63, 2 }
 0x2cb   : > { %v307_v1 = vadd.f32 %v306_v0, %v305_v63 }
 0x2cd   : > { %v308_v2 = vrot.slane %v307_v1, 1 }
 0x2cf   : > { %v309_v3 = vadd.f32 %v308_v2, %v307_v1 }
 0x2d1   : > { %471 = vpush %v309_v3 }
 0x302   : > { %s472_s30 = spop %471 }
 0x303   : > { %s311_s3 = ssub.f32 0.0, %s472_s30 }
 0x305   : > { %v312_v4 = vstv %s311_s3 }
 0x306   : > { %313 = vst [vmem:[%s850_s7] sm:$0xff] %v312_v4 }
 0x307 PF: > { %p904_p5 = scmp.eq.s32.totalorder %s697_s13, 1 }
 0x309   : > { %317 = sbr.rel (%p904_p5) target bundleno = 990 (0x3de), region = 44 }
 0x30e   : > { %vm318_vm6 = vcmask 7168  }
 0x30f   : > { %v319_v5 = vsel %vm318_vm6, %v279_v48, 0.0  ;;  %v320_v6 = vsel %vm318_vm6, %v282_v49, 0.0 }
 0x310   : > { %v321_v7 = vadd.f32 %v320_v6, %v319_v5 }
 0x312   : > { %322 = vadd.xlane.f32.xlu0 %v321_v7 }
 0x39b   : > { %v323_v8 = vpop.xlane.xlu0 %322 }
 0x39c   : > { %v324_v9 = vrot.slane %v323_v8, 4 }
 0x39e   : > { %v325_v10 = vadd.f32 %v324_v9, %v323_v8 }
 0x3a0   : > { %v326_v11 = vrot.slane %v325_v10, 2 }
 0x3a2   : > { %v327_v12 = vadd.f32 %v326_v11, %v325_v10 }
 0x3a4   : > { %v328_v13 = vrot.slane %v327_v12, 1 }
 0x3a6   : > { %v329_v14 = vadd.f32 %v328_v13, %v327_v12 }
 0x3a8   : > { %473 = vpush %v329_v14 }
 0x3d9   : > { %s474_s4 = spop %473 }
 0x3da   : > { %s331_s5 = ssub.f32 0.0, %s474_s4 }
 0x3dc   : > { %v332_v15 = vstv %s331_s5 }
 0x3dd   : > { %333 = vst [vmem:[%s850_s7] sm:$0xff] %v332_v15 }
 0x3de PF: > { %s466_s8 = sshll.u32 %s697_s13, 7  ;;  %s348_s27 = sshll.u32 %s850_s7, 4  ;;  %s349_s27 = int_to_ptr.vmem [resolvable:$true] %s348_s27 }
 0x3df   : > { %s346_s23 = scalar_lea.hbm %s896_s2, %s466_s8  ;;  %s335_s19 = scalar_lea.sflag [#allocation4], %s826_s29 }
 0x3e0   : > { %s584_s6 = scalar_lea.vmem %s349_s27, 128  ;;  %p905_p8 = scmp.ne.s32.totalorder %s902_s21, 0 }
 0x3e1   : > { %p585_p4 = scmp.ne.s32.totalorder %s349_s27, %s584_s6  ;;  %s660_s26 = smov [#allocation7]  }
 0x3e2   : > { %s588_s28 = sshll.u32 %s660_s26, 4  ;;  %s589_s28 = int_to_ptr.vmem [resolvable:$false] %s588_s28 }
 0x3e3   : > { %p586_p12 = pnand %p585_p4, %p905_p8  ;;  %s590_s17 = scalar_lea.vmem %s589_s28, 256 }
 0x3e4   : > { %p591_p1 = scmp.lt.s32.totalorder %s349_s27, %s589_s28  ;;  %p592_p3 = scmp.lt.s32.totalorder %s590_s17, %s584_s6 }
 0x3e5   : > { %p587_p0 = pneg %p586_p12 }
 0x3e6   : > { %p593_p7 = por %p592_p3, %p591_p1 }
 0x3e8   : > { %p594_p9 = pnand %p593_p7, %p587_p0 }
 0x3ea   : > { %597 = shalt.err (!%p594_p9)
}
 0x3eb   : > { %s598_s13 = scalar_lea.hbm %s346_s23, 128  ;;  %s602_s20 = scalar_lea.hbm %s896_s2, 256 }
 0x3ec   : > { %p599_p10 = scmp.ne.s32.totalorder %s346_s23, %s598_s13  ;;  %p603_p2 = scmp.lt.s32.totalorder %s346_s23, %s896_s2 }
 0x3ed   : > { %p604_p6 = scmp.lt.s32.totalorder %s602_s20, %s598_s13 }
 0x3ee   : > { %p600_p11 = pnand %p599_p10, %p905_p8 }
 0x3ef   : > { %p605_p5 = por %p604_p6, %p603_p2 }
 0x3f0   : > { %p601_p13 = pneg %p600_p11 }
 0x3f2   : > { %p606_p4 = pnand %p605_p5, %p601_p13 }
 0x3f4   : > { %609 = shalt.err (!%p606_p4)
}
 0x3f5   : > { %477 = dma.vmem_to_hbm [thread:$0]  (%p905_p8), %s349_s27, 128, %s346_s23, %s335_s19  }
 0x3f6 PF: > { %s360_s30 = sand.u32 1, %s640_s9   ;;  %p906_p12 = scmp.ne.s32.totalorder %s903_s22, 0 }
 0x3f7   : > { %p907_p0 = scmp.ge.s32.totalorder %s652_s12, 2  ;;  %s361_s3 = scalar_lea.sflag [#allocation4], %s360_s30 }
 0x3f9   : > { %p480_p1 = pnand %p907_p0, %p906_p12 }
 0x3fb   : > { %p481_p3 = pneg %p480_p1 }
 0x3fd   : > { %635 = dma.done.wait (%p481_p3), %s361_s3, 128  }
 0x3fe   : > { %637 = vsyncadd (%p481_p3), %s361_s3, 4294967168  ;;  %p18_p7 = scmp.ge.s32.totalorder %s701_s15, 4   ;;  %s908_s9 = smov %s644_s10 }
 0x3ff   : > { %s909_s10 = smov %s648_s11  ;;  %s910_s11 = smov %s713_s18 }
 0x400   : > { %s911_s12 = smov %s701_s15  ;;  %20 = sbr.rel (!%p18_p7) target bundleno = 7 (0x7), region = 94 }
 0x405   :  { %366 = vsyncpa [#allocation3], 1 }
 0x406   :  { %368 = vsyncpa [#allocation3 + $0x1], 1 }
 0x407   :  { %369 = vsyncpa [#allocation6], 1 }
 0x408   :  { %371 = vsyncpa [#allocation6 + $0x1], 1 }
 0x409   :  { %372 = vsyncpa [#allocation4], 1 }
 0x40a   :  { %374 = vsyncpa [#allocation4 + $0x1], 1 }

</bundles_post_ra>
